<compile_context>
chip_gen: v7x
topology: tpu7x:2x2x1
jax: 0.10.0
libtpu: 0.0.40
codegen_flags: <defaults>
</compile_context>

<pallas_src>
import functools

import jax
import jax.numpy as jnp
from jax.experimental import pallas as pl
from jax.experimental.pallas import tpu as pltpu

BN_EPS = 1e-5
LANES = 128
PAD_BIAS = -1.0e4  # sentinel bias for padded logit columns: far below any real logit,
                   # but small enough that exp's range reduction is trivially safe.


def _distill_kernel(n_hidden, *refs):
    """Fused MLP + BatchNorm(batch-stats) + softmax kernel (everything VMEM-resident).

    refs layout:
      x_ref                            (f32 [batch, in_pad], lane-dense if caller padded),
      w_0 ... w_{n_hidden-1}           (bf16, feature dims padded to LANES),
      w_out                            (bf16, 1/temperature pre-folded),
      vecs                             (f32 [3*n_hidden+2, LANES]:
                                          rows 3i..3i+2 = b_i, gamma_i, beta_i,
                                          row 3n        = b_out/T with padded cols = PAD_BIAS,
                                          row 3n+1      = {1,0} valid-output-column mask),
      out_ref                          ([batch, LANES] lane-dense softmax slab).
    """
    x_ref = refs[0]
    w_refs = refs[1:1 + n_hidden]
    w_out_ref = refs[1 + n_hidden]
    vecs_ref = refs[2 + n_hidden]
    out_ref = refs[3 + n_hidden]

    batch = x_ref.shape[0]
    inv_batch = 1.0 / batch

    h = x_ref[...].astype(jnp.float32)  # elementwise path stays f32 (v5e-safe)

    for i in range(n_hidden):
        b = vecs_ref[3 * i + 0:3 * i + 1, :]      # [1, LANES] f32
        gamma = vecs_ref[3 * i + 1:3 * i + 2, :]
        beta = vecs_ref[3 * i + 2:3 * i + 3, :]

        # Linear on the MXU: bf16 operands, f32 accumulation; bias add in f32.
        y = jnp.dot(h.astype(jnp.bfloat16), w_refs[i][...],
                    preferred_element_type=jnp.float32) + b
        # ReLU
        h = jnp.maximum(y, 0.0)

        # BatchNorm1d, training mode (biased batch stats), one-pass E[x]/E[x^2].
        # The max() clamp guards the E[x^2]-E[x]^2 cancellation; switch to a centered
        # two-pass variance if activation scales ever grow large.
        mean = jnp.sum(h, axis=0, keepdims=True) * inv_batch
        ex2 = jnp.sum(h * h, axis=0, keepdims=True) * inv_batch
        var = jnp.maximum(ex2 - mean * mean, 0.0)

        # Perf review: fold the BN affine into per-feature scale/shift on the [1,128]
        # stat rows; the [batch,128] tile then only does one mul + one add.
        scale = gamma * jax.lax.rsqrt(var + BN_EPS)
        shift = beta - mean * scale
        h = h * scale + shift
        # (padded columns stay identically 0: zero weights/bias -> mean=var=0,
        #  gamma=beta=0 -> scale=shift=0.)

    # Output Linear: 1/temperature already folded into w_out & b_out.  Padded output
    # columns carry the PAD_BIAS sentinel so the row max is always a real column.
    b_out = vecs_ref[3 * n_hidden + 0:3 * n_hidden + 1, :]
    valid = vecs_ref[3 * n_hidden + 1:3 * n_hidden + 2, :]   # 1.0 real col / 0.0 padding
    logits = jnp.dot(h.astype(jnp.bfloat16), w_out_ref[...],
                     preferred_element_type=jnp.float32) + b_out

    # Numerically stable softmax.  Padded lanes are forced to exactly 0 with a select
    # (robust even if exp of the sentinel misbehaved), and the denominator uses an
    # EXACT division -- the approximate EUP reciprocal broke the sum-to-1 guarantee.
    m = jnp.max(logits, axis=-1, keepdims=True)
    e = jnp.where(valid > 0.5, jnp.exp(logits - m), 0.0)
    denom = jnp.sum(e, axis=-1, keepdims=True)               # >= 1 (real max lane -> e=1)
    out_ref[...] = (e / denom).astype(out_ref.dtype)


def _vmem_limit_bytes():
    """Generation-aware scoped-VMEM budget (perf review, v5e/v6e vs v7x items)."""
    cap = None
    try:
        cap = getattr(pltpu.get_tpu_info(), "vmem_capacity_bytes", None)
    except Exception:
        cap = None
    if not cap:
        cap = 64 * 1024 * 1024  # conservative: v7x physical floor
    # Leave 16 MiB headroom under the physical cap; never request more than ~100 MiB.
    limit = min(cap - 16 * 1024 * 1024, 100 * 1024 * 1024)
    return int(max(limit, 32 * 1024 * 1024))


def init_params(key, input_dim, hidden_dims, output_dim, dtype=jnp.float32):
    """Raw (PyTorch-style) parameters: [w, b, gamma, beta]*n_hidden + [w_out, b_out]."""
    params = []
    dims = [input_dim] + list(hidden_dims)
    for i in range(len(dims) - 1):
        fan_in, fan_out = dims[i], dims[i + 1]
        key, kw, kb = jax.random.split(key, 3)
        bound = 1.0 / (fan_in ** 0.5)
        w = jax.random.uniform(kw, (fan_in, fan_out), dtype, -bound, bound)
        b = jax.random.uniform(kb, (1, fan_out), dtype, -bound, bound)
        gamma = jnp.ones((1, fan_out), dtype)   # BatchNorm1d weight init
        beta = jnp.zeros((1, fan_out), dtype)   # BatchNorm1d bias init
        params.extend([w, b, gamma, beta])
    fan_in = dims[-1]
    key, kw, kb = jax.random.split(key, 3)
    bound = 1.0 / (fan_in ** 0.5)
    w_out = jax.random.uniform(kw, (fan_in, output_dim), dtype, -bound, bound)
    b_out = jax.random.uniform(kb, (1, output_dim), dtype, -bound, bound)
    params.extend([w_out, b_out])
    return params


def pack_params(raw_params, hidden_dims, output_dim, temperature, input_pad=None):
    """One-time parameter transform (NOT per-call work):
       - pad every hidden/output feature dim to a multiple of 128 lanes with zeros,
       - optionally pad the first layer's input dim (lane-dense x upstream),
       - pack all [1, F] vectors + the output mask into ONE [3*n_hidden+2, pad] f32 array,
       - fold 1/temperature into the output Linear (exact for power-of-two T),
       - set padded output-bias columns to the PAD_BIAS sentinel,
       - cast matmul weights to bf16 (f32 accumulation happens in-kernel)."""
    n_hidden = len(hidden_dims)
    max_feat = max(list(hidden_dims) + [output_dim])
    feat_pad = -(-max_feat // LANES) * LANES

    ws = []
    vec_rows = []
    idx = 0
    for i in range(n_hidden):
        w, b, g, beta = raw_params[idx:idx + 4]
        idx += 4
        fan_in, fan_out = w.shape
        if i == 0:
            in_pad = fan_in if input_pad is None else max(input_pad, fan_in)
        else:
            in_pad = feat_pad
        w_p = jnp.zeros((in_pad, feat_pad), jnp.float32).at[:fan_in, :fan_out].set(w)
        ws.append(w_p.astype(jnp.bfloat16))
        vec_rows.append(jnp.zeros((1, feat_pad), jnp.float32).at[:, :fan_out].set(b))
        vec_rows.append(jnp.zeros((1, feat_pad), jnp.float32).at[:, :fan_out].set(g))
        vec_rows.append(jnp.zeros((1, feat_pad), jnp.float32).at[:, :fan_out].set(beta))

    w_out, b_out = raw_params[idx], raw_params[idx + 1]
    fan_in, fan_out = w_out.shape
    inv_t = 1.0 / temperature
    w_out_p = jnp.zeros((feat_pad, feat_pad), jnp.float32).at[:fan_in, :fan_out].set(w_out * inv_t)
    b_out_p = jnp.full((1, feat_pad), PAD_BIAS, jnp.float32).at[:, :fan_out].set(b_out * inv_t)
    vec_rows.append(b_out_p)
    # {1,0} mask over real output columns (exact zeroing of padded softmax lanes).
    vec_rows.append(jnp.zeros((1, feat_pad), jnp.float32).at[:, :fan_out].set(1.0))

    vecs = jnp.concatenate(vec_rows, axis=0)  # [3*n_hidden+2, feat_pad] f32
    return ws, w_out_p.astype(jnp.bfloat16), vecs


def distillation_forward(x, packed, n_hidden, output_dim, out_dtype=jnp.float32):
    """One pallas_call; whole (small) batch resident in VMEM; lane-dense output slab.
    Pass out_dtype=jnp.bfloat16 to halve the writeback if the consumer tolerates it."""
    ws, w_out, vecs = packed
    assert x.shape[1] == ws[0].shape[0], "x feature dim must match packed first-layer rows"
    batch = x.shape[0]
    feat_pad = w_out.shape[1]
    kernel = functools.partial(_distill_kernel, n_hidden)
    vmem = pl.BlockSpec(memory_space=pltpu.MemorySpace.VMEM)
    out_padded = pl.pallas_call(
        kernel,
        out_shape=jax.ShapeDtypeStruct((batch, feat_pad), out_dtype),
        in_specs=[vmem] * (1 + n_hidden + 2),
        out_specs=vmem,
        compiler_params=pltpu.CompilerParams(
            vmem_limit_bytes=_vmem_limit_bytes(),
        ),
    )(x, *ws, w_out, vecs)
    # Layout plumbing: drop the lane padding on the softmax output.
    # TODO(synk): fuse the downstream distillation loss into this kernel to eliminate
    # this XLA slice (and one launch) -- the pipeline is launch/overhead-bound here.
    return out_padded[:, :output_dim]


def _reference_forward(x, raw_params, n_hidden, temperature, mimic_bf16=False):
    """Pure-JAX reference (PyTorch semantics). mimic_bf16=True mirrors the kernel's
    bf16 matmul operands (f32 accumulation) for a tighter comparison."""
    cast = (lambda a: a.astype(jnp.bfloat16)) if mimic_bf16 else (lambda a: a)
    h = x.astype(jnp.float32)
    idx = 0
    for _ in range(n_hidden):
        w, b, g, beta = raw_params[idx:idx + 4]
        idx += 4
        y = jnp.dot(cast(h), cast(w), preferred_element_type=jnp.float32) + b
        h = jnp.maximum(y, 0.0)
        mean = jnp.mean(h, axis=0, keepdims=True)
        var = jnp.mean((h - mean) ** 2, axis=0, keepdims=True)
        h = (h - mean) / jnp.sqrt(var + BN_EPS) * g + beta
    w_out, b_out = raw_params[idx], raw_params[idx + 1]
    logits = jnp.dot(cast(h), cast(w_out), preferred_element_type=jnp.float32) + b_out
    return jax.nn.softmax(logits / temperature, axis=-1)


if __name__ == "__main__":
    # Small shapes consistent with the module's forward (x is [batch, input_dim]).
    # batch=128 so each MXU pass has a full M dimension.
    batch = 128
    input_dim = 16
    hidden_dims = [32, 32]
    output_dim = 8
    temperature = 2.0

    key = jax.random.PRNGKey(0)
    kx, kp = jax.random.split(key)
    x = jax.random.normal(kx, (batch, input_dim), jnp.float32)
    # Perf review: produce a lane-dense x upstream (one-time zero pad to 128 lanes)
    # so the first matmul is an unmasked K=128 MXU pass.
    x_dense = jnp.zeros((batch, LANES), jnp.float32).at[:, :input_dim].set(x)

    raw = init_params(kp, input_dim, hidden_dims, output_dim)
    packed = pack_params(raw, hidden_dims, output_dim, temperature, input_pad=LANES)

    fwd = jax.jit(functools.partial(distillation_forward,
                                    n_hidden=len(hidden_dims), output_dim=output_dim))
    out = fwd(x_dense, packed)
    out = jax.block_until_ready(out)

    assert out.shape == (batch, output_dim)
    # Exact division + exact lane masking -> rows sum to 1 within f32 rounding.
    assert bool(jnp.all(jnp.abs(jnp.sum(out, axis=-1) - 1.0) < 1e-4))

    ref_bf16 = _reference_forward(x, raw, len(hidden_dims), temperature, mimic_bf16=True)
    ref_f32 = _reference_forward(x, raw, len(hidden_dims), temperature, mimic_bf16=False)
    assert bool(jnp.allclose(out, ref_bf16, atol=5e-3))   # same bf16 matmul operands
    assert bool(jnp.allclose(out, ref_f32, atol=2e-2))    # vs. pure-f32 PyTorch semantics

    print("KERNEL_OK")
</pallas_src>

<mosaic_0001>
module attributes {stable_mosaic.version = 11 : i64} {
  func.func @_distill_kernel(%arg0: memref<128x128xf32, #tpu.memory_space<vmem>>, %arg1: memref<128x128xbf16, #tpu.memory_space<vmem>>, %arg2: memref<128x128xbf16, #tpu.memory_space<vmem>>, %arg3: memref<128x128xbf16, #tpu.memory_space<vmem>>, %arg4: memref<8x128xf32, #tpu.memory_space<vmem>>, %arg5: memref<128x128xf32, #tpu.memory_space<vmem>>) attributes {dimension_semantics = [], scalar_prefetch = 0 : i64, scratch_operands = 0 : i64, tpu.core_type = #tpu.core_type<tc>} {
    %c0 = arith.constant 0 : index
    %c0_0 = arith.constant 0 : index
    %0 = vector.load %arg0[%c0, %c0_0] : memref<128x128xf32, #tpu.memory_space<vmem>>, vector<128x128xf32>
    %c0_1 = arith.constant 0 : index
    %c0_2 = arith.constant 0 : index
    %1 = vector.load %arg4[%c0_1, %c0_2] : memref<8x128xf32, #tpu.memory_space<vmem>>, vector<1x128xf32>
    %c1 = arith.constant 1 : index
    %c0_3 = arith.constant 0 : index
    %2 = vector.load %arg4[%c1, %c0_3] : memref<8x128xf32, #tpu.memory_space<vmem>>, vector<1x128xf32>
    %c2 = arith.constant 2 : index
    %c0_4 = arith.constant 0 : index
    %3 = vector.load %arg4[%c2, %c0_4] : memref<8x128xf32, #tpu.memory_space<vmem>>, vector<1x128xf32>
    %4 = arith.truncf %0 : vector<128x128xf32> to vector<128x128xbf16>
    %c0_5 = arith.constant 0 : index
    %c0_6 = arith.constant 0 : index
    %5 = vector.load %arg1[%c0_5, %c0_6] : memref<128x128xbf16, #tpu.memory_space<vmem>>, vector<128x128xbf16>
    %cst = arith.constant dense<0.000000e+00> : vector<128x128xf32>
    %6 = tpu.matmul %4, %5, %cst {dimension_numbers = #tpu.dot_dimension_numbers<[1], [0], [0], [1], [0, 0, 1, 1], [], []>} : vector<128x128xbf16>, vector<128x128xbf16>, vector<128x128xf32> -> vector<128x128xf32>
    %7 = vector.broadcast %1 : vector<1x128xf32> to vector<128x128xf32>
    %8 = arith.addf %6, %7 : vector<128x128xf32>
    %cst_7 = arith.constant 0.000000e+00 : f32
    %9 = vector.broadcast %cst_7 : f32 to vector<128x128xf32>
    %10 = arith.maximumf %8, %9 : vector<128x128xf32>
    %cst_8 = arith.constant dense<0.000000e+00> : vector<128xf32>
    %11 = vector.multi_reduction <add>, %10, %cst_8 [0] : vector<128x128xf32> to vector<128xf32>
    %12 = vector.shape_cast %11 : vector<128xf32> to vector<1x128xf32>
    %cst_9 = arith.constant 7.812500e-03 : f32
    %13 = vector.broadcast %cst_9 : f32 to vector<1x128xf32>
    %14 = arith.mulf %12, %13 : vector<1x128xf32>
    %15 = arith.mulf %10, %10 : vector<128x128xf32>
    %cst_10 = arith.constant dense<0.000000e+00> : vector<128xf32>
    %16 = vector.multi_reduction <add>, %15, %cst_10 [0] : vector<128x128xf32> to vector<128xf32>
    %17 = vector.shape_cast %16 : vector<128xf32> to vector<1x128xf32>
    %cst_11 = arith.constant 7.812500e-03 : f32
    %18 = vector.broadcast %cst_11 : f32 to vector<1x128xf32>
    %19 = arith.mulf %17, %18 : vector<1x128xf32>
    %20 = arith.mulf %14, %14 : vector<1x128xf32>
    %21 = arith.subf %19, %20 : vector<1x128xf32>
    %cst_12 = arith.constant 0.000000e+00 : f32
    %22 = vector.broadcast %cst_12 : f32 to vector<1x128xf32>
    %23 = arith.maximumf %21, %22 : vector<1x128xf32>
    %cst_13 = arith.constant 9.99999974E-6 : f32
    %24 = vector.broadcast %cst_13 : f32 to vector<1x128xf32>
    %25 = arith.addf %23, %24 : vector<1x128xf32>
    %26 = math.rsqrt %25 : vector<1x128xf32>
    %27 = arith.mulf %2, %26 : vector<1x128xf32>
    %28 = arith.mulf %14, %27 : vector<1x128xf32>
    %29 = arith.subf %3, %28 : vector<1x128xf32>
    %30 = vector.broadcast %27 : vector<1x128xf32> to vector<128x128xf32>
    %31 = arith.mulf %10, %30 : vector<128x128xf32>
    %32 = vector.broadcast %29 : vector<1x128xf32> to vector<128x128xf32>
    %33 = arith.addf %31, %32 : vector<128x128xf32>
    %c3 = arith.constant 3 : index
    %c0_14 = arith.constant 0 : index
    %34 = vector.load %arg4[%c3, %c0_14] : memref<8x128xf32, #tpu.memory_space<vmem>>, vector<1x128xf32>
    %c4 = arith.constant 4 : index
    %c0_15 = arith.constant 0 : index
    %35 = vector.load %arg4[%c4, %c0_15] : memref<8x128xf32, #tpu.memory_space<vmem>>, vector<1x128xf32>
    %c5 = arith.constant 5 : index
    %c0_16 = arith.constant 0 : index
    %36 = vector.load %arg4[%c5, %c0_16] : memref<8x128xf32, #tpu.memory_space<vmem>>, vector<1x128xf32>
    %37 = arith.truncf %33 : vector<128x128xf32> to vector<128x128xbf16>
    %c0_17 = arith.constant 0 : index
    %c0_18 = arith.constant 0 : index
    %38 = vector.load %arg2[%c0_17, %c0_18] : memref<128x128xbf16, #tpu.memory_space<vmem>>, vector<128x128xbf16>
    %cst_19 = arith.constant dense<0.000000e+00> : vector<128x128xf32>
    %39 = tpu.matmul %37, %38, %cst_19 {dimension_numbers = #tpu.dot_dimension_numbers<[1], [0], [0], [1], [0, 0, 1, 1], [], []>} : vector<128x128xbf16>, vector<128x128xbf16>, vector<128x128xf32> -> vector<128x128xf32>
    %40 = vector.broadcast %34 : vector<1x128xf32> to vector<128x128xf32>
    %41 = arith.addf %39, %40 : vector<128x128xf32>
    %cst_20 = arith.constant 0.000000e+00 : f32
    %42 = vector.broadcast %cst_20 : f32 to vector<128x128xf32>
    %43 = arith.maximumf %41, %42 : vector<128x128xf32>
    %cst_21 = arith.constant dense<0.000000e+00> : vector<128xf32>
    %44 = vector.multi_reduction <add>, %43, %cst_21 [0] : vector<128x128xf32> to vector<128xf32>
    %45 = vector.shape_cast %44 : vector<128xf32> to vector<1x128xf32>
    %cst_22 = arith.constant 7.812500e-03 : f32
    %46 = vector.broadcast %cst_22 : f32 to vector<1x128xf32>
    %47 = arith.mulf %45, %46 : vector<1x128xf32>
    %48 = arith.mulf %43, %43 : vector<128x128xf32>
    %cst_23 = arith.constant dense<0.000000e+00> : vector<128xf32>
    %49 = vector.multi_reduction <add>, %48, %cst_23 [0] : vector<128x128xf32> to vector<128xf32>
    %50 = vector.shape_cast %49 : vector<128xf32> to vector<1x128xf32>
    %cst_24 = arith.constant 7.812500e-03 : f32
    %51 = vector.broadcast %cst_24 : f32 to vector<1x128xf32>
    %52 = arith.mulf %50, %51 : vector<1x128xf32>
    %53 = arith.mulf %47, %47 : vector<1x128xf32>
    %54 = arith.subf %52, %53 : vector<1x128xf32>
    %cst_25 = arith.constant 0.000000e+00 : f32
    %55 = vector.broadcast %cst_25 : f32 to vector<1x128xf32>
    %56 = arith.maximumf %54, %55 : vector<1x128xf32>
    %cst_26 = arith.constant 9.99999974E-6 : f32
    %57 = vector.broadcast %cst_26 : f32 to vector<1x128xf32>
    %58 = arith.addf %56, %57 : vector<1x128xf32>
    %59 = math.rsqrt %58 : vector<1x128xf32>
    %60 = arith.mulf %35, %59 : vector<1x128xf32>
    %61 = arith.mulf %47, %60 : vector<1x128xf32>
    %62 = arith.subf %36, %61 : vector<1x128xf32>
    %63 = vector.broadcast %60 : vector<1x128xf32> to vector<128x128xf32>
    %64 = arith.mulf %43, %63 : vector<128x128xf32>
    %65 = vector.broadcast %62 : vector<1x128xf32> to vector<128x128xf32>
    %66 = arith.addf %64, %65 : vector<128x128xf32>
    %c6 = arith.constant 6 : index
    %c0_27 = arith.constant 0 : index
    %67 = vector.load %arg4[%c6, %c0_27] : memref<8x128xf32, #tpu.memory_space<vmem>>, vector<1x128xf32>
    %c7 = arith.constant 7 : index
    %c0_28 = arith.constant 0 : index
    %68 = vector.load %arg4[%c7, %c0_28] : memref<8x128xf32, #tpu.memory_space<vmem>>, vector<1x128xf32>
    %69 = arith.truncf %66 : vector<128x128xf32> to vector<128x128xbf16>
    %c0_29 = arith.constant 0 : index
    %c0_30 = arith.constant 0 : index
    %70 = vector.load %arg3[%c0_29, %c0_30] : memref<128x128xbf16, #tpu.memory_space<vmem>>, vector<128x128xbf16>
    %cst_31 = arith.constant dense<0.000000e+00> : vector<128x128xf32>
    %71 = tpu.matmul %69, %70, %cst_31 {dimension_numbers = #tpu.dot_dimension_numbers<[1], [0], [0], [1], [0, 0, 1, 1], [], []>} : vector<128x128xbf16>, vector<128x128xbf16>, vector<128x128xf32> -> vector<128x128xf32>
    %72 = vector.broadcast %67 : vector<1x128xf32> to vector<128x128xf32>
    %73 = arith.addf %71, %72 : vector<128x128xf32>
    %cst_32 = arith.constant dense<0xFF800000> : vector<128xf32>
    %74 = vector.multi_reduction <maximumf>, %73, %cst_32 [1] : vector<128x128xf32> to vector<128xf32>
    %75 = vector.shape_cast %74 : vector<128xf32> to vector<128x1xf32>
    %cst_33 = arith.constant 5.000000e-01 : f32
    %76 = vector.broadcast %cst_33 : f32 to vector<1x128xf32>
    %77 = arith.cmpf ogt, %68, %76 : vector<1x128xf32>
    %78 = vector.broadcast %75 : vector<128x1xf32> to vector<128x128xf32>
    %79 = arith.subf %73, %78 : vector<128x128xf32>
    %80 = math.exp %79 : vector<128x128xf32>
    %cst_34 = arith.constant 0.000000e+00 : f32
    %81 = vector.shape_cast %77 : vector<1x128xi1> to vector<1x128xi1>
    %82 = vector.broadcast %81 : vector<1x128xi1> to vector<128x128xi1>
    %83 = vector.broadcast %cst_34 : f32 to vector<128x128xf32>
    %84 = arith.select %82, %80, %83 : vector<128x128xi1>, vector<128x128xf32>
    %cst_35 = arith.constant dense<0.000000e+00> : vector<128xf32>
    %85 = vector.multi_reduction <add>, %84, %cst_35 [1] : vector<128x128xf32> to vector<128xf32>
    %86 = vector.shape_cast %85 : vector<128xf32> to vector<128x1xf32>
    %87 = vector.broadcast %86 : vector<128x1xf32> to vector<128x128xf32>
    %88 = arith.divf %84, %87 : vector<128x128xf32>
    %c0_36 = arith.constant 0 : index
    %c0_37 = arith.constant 0 : index
    %89 = vector.load %arg5[%c0_36, %c0_37] : memref<128x128xf32, #tpu.memory_space<vmem>>, vector<128x128xf32>
    tpu.vector_store %arg5[%c0_36, %c0_37], %88 {strides = array<i32>} : memref<128x128xf32, #tpu.memory_space<vmem>>, vector<128x128xf32>,
    return
  }
}

</mosaic_0001>

<bundles_post_ra>
// kernel: distillation_forward.1
= control target key start
LH: loop header
LB: loop body
LE: loop exit
PB: predicated region body
PF: predicated region fallthrough
CT: control target
= control target key end

     0   :  { %10 = vsyncpa [#allocation3], 0  ;;  %s1953_s0 = inlined_call_operand.hbm [shape: f32[128,128], index: 0, kind: input, shape index: {}]   ;;  %s1954_s1 = inlined_call_operand.hbm [shape: bf16[128,128], index: 1, kind: input, shape index: {}]   ;;  %s1955_s2 = inlined_call_operand.hbm [shape: bf16[128,128], index: 2, kind: input, shape index: {}]   ;;  %s1956_s3 = inlined_call_operand.hbm [shape: bf16[128,128], index: 3, kind: input, shape index: {}]   ;;  %s1957_s4 = inlined_call_operand.vmem [shape: f32[8,128], index: 4, kind: input, shape index: {}]   ;;  %s1958_s5 = inlined_call_operand.vmem [shape: f32[128,128], index: 5, kind: output, shape index: {}]  }
   0x1   :  { %11 = vsyncpa [#allocation5], 0 }
   0x2   :  { %12 = vsyncpa [#allocation8], 0  ;;  %s1439_s18 = smov [#allocation4]   ;;  %s1345_s22 = scalar_lea.hbm %s1954_s1, 1024 }
   0x3   :  { %s30_s19 = sshll.u32 %s1439_s18, 4  ;;  %p1346_p0 = scmp.ne.s32.totalorder %s1954_s1, %s1345_s22  ;;  %s31_s19 = int_to_ptr.vmem [resolvable:$true] %s30_s19 }
   0x4   :  { %p1349_p1 = scmp.lt.u32.totalorder %s1345_s22, %s1954_s1 }
   0x6   :  { %p1351_p2 = pnand %p1349_p1, %p1346_p0 }
   0x8   :  { %1354 = shalt.err (!%p1351_p2)
}
   0x9   :  { %s1355_s27 = scalar_lea.vmem %s31_s19, 1024  ;;  %p1360_p4 = scmp.lt.s32.totalorder %s31_s19, %s31_s19 }
   0xa   :  { %p1356_p3 = scmp.ne.s32.totalorder %s31_s19, %s1355_s27  ;;  %p1361_p5 = scmp.lt.s32.totalorder %s1355_s27, %s1355_s27 }
   0xc   :  { %p1362_p6 = por %p1361_p5, %p1360_p4 }
   0xe   :  { %p1363_p7 = pnand %p1362_p6, %p1356_p3 }
  0x10   :  { %1366 = shalt.err (!%p1363_p7)
}
  0x11   :  { %s1440_s28 = smov 64   ;;  %s1441_s29 = smov 4  }
  0x12   :  { %36 = dma.hbm_to_vmem [thread:$0]  %s1954_s1, 1024, %s31_s19, [#allocation5], %s1440_s28, %s1440_s28, %s1441_s29  }
  0x13   :  { %s1442_s7 = smov [#allocation2]   ;;  %s1367_s11 = scalar_lea.hbm %s1953_s0, 2048 }
  0x14   :  { %s18_s8 = sshll.u32 %s1442_s7, 4  ;;  %p1368_p8 = scmp.ne.s32.totalorder %s1953_s0, %s1367_s11  ;;  %s19_s8 = int_to_ptr.vmem [resolvable:$true] %s18_s8 }
  0x15   :  { %p1371_p9 = scmp.lt.u32.totalorder %s1367_s11, %s1953_s0 }
  0x17   :  { %p1373_p10 = pnand %p1371_p9, %p1368_p8 }
  0x19   :  { %1376 = shalt.err (!%p1373_p10)
}
  0x1a   :  { %s1377_s16 = scalar_lea.vmem %s19_s8, 2048  ;;  %p1382_p12 = scmp.lt.s32.totalorder %s19_s8, %s19_s8 }
  0x1b   :  { %p1378_p11 = scmp.ne.s32.totalorder %s19_s8, %s1377_s16  ;;  %p1383_p13 = scmp.lt.s32.totalorder %s1377_s16, %s1377_s16 }
  0x1d   :  { %p1384_p0 = por %p1383_p13, %p1382_p12 }
  0x1f   :  { %p1385_p1 = pnand %p1384_p0, %p1378_p11 }
  0x21   :  { %1388 = shalt.err (!%p1385_p1)
}
  0x22   :  { %s1443_s1 = smov 128   ;;  %s1444_s17 = smov 8  }
  0x23   :  { %24 = dma.hbm_to_vmem [thread:$0]  %s1953_s0, 2048, %s19_s8, [#allocation3], %s1443_s1, %s1443_s1, %s1444_s17  }
  0x24   :  { %s1445_s20 = smov [#allocation6]   ;;  %s1446_s22 = smov [#allocation7]  }
  0x25   :  { %s42_s21 = sshll.u32 %s1445_s20, 4  ;;  %s54_s23 = sshll.u32 %s1446_s22, 4  ;;  %s43_s21 = int_to_ptr.vmem [resolvable:$true] %s42_s21  ;;  %s1505_s23 = int_to_ptr.vmem [resolvable:$true] %s54_s23 }
  0x26   :  { %s1389_s26 = scalar_lea.hbm %s1955_s2, 1024 }
  0x27   :  { %p1390_p2 = scmp.ne.s32.totalorder %s1955_s2, %s1389_s26  ;;  %p1393_p3 = scmp.lt.u32.totalorder %s1389_s26, %s1955_s2 }
  0x29   :  { %p1395_p4 = pnand %p1393_p3, %p1390_p2 }
  0x2b   :  { %1398 = shalt.err (!%p1395_p4)
}
  0x2c   :  { %s1399_s0 = scalar_lea.vmem %s43_s21, 1024  ;;  %p1404_p6 = scmp.lt.s32.totalorder %s43_s21, %s43_s21 }
  0x2d   :  { %p1400_p5 = scmp.ne.s32.totalorder %s43_s21, %s1399_s0  ;;  %p1405_p7 = scmp.lt.s32.totalorder %s1399_s0, %s1399_s0 }
  0x2f   :  { %p1406_p8 = por %p1405_p7, %p1404_p6 }
  0x31   :  { %p1407_p9 = pnand %p1406_p8, %p1400_p5 }
  0x33   :  { %1410 = shalt.err (!%p1407_p9)
}
  0x34   :  { %48 = dma.hbm_to_vmem [thread:$0]  %s1955_s2, 1024, %s43_s21, [#allocation5], %s1440_s28, %s1440_s28, %s1441_s29  }
  0x35   :  { %s1411_s12 = scalar_lea.hbm %s1956_s3, 1024 }
  0x36   :  { %p1412_p10 = scmp.ne.s32.totalorder %s1956_s3, %s1411_s12  ;;  %p1415_p11 = scmp.lt.u32.totalorder %s1411_s12, %s1956_s3 }
  0x38   :  { %p1417_p12 = pnand %p1415_p11, %p1412_p10 }
  0x3a   :  { %1420 = shalt.err (!%p1417_p12)
}
  0x3b   :  { %s1421_s1 = scalar_lea.vmem %s1505_s23, 1024  ;;  %p1426_p0 = scmp.lt.s32.totalorder %s1505_s23, %s1505_s23 }
  0x3c   :  { %p1422_p13 = scmp.ne.s32.totalorder %s1505_s23, %s1421_s1  ;;  %p1427_p1 = scmp.lt.s32.totalorder %s1421_s1, %s1421_s1 }
  0x3e   :  { %p1428_p2 = por %p1427_p1, %p1426_p0 }
  0x40   :  { %p1429_p3 = pnand %p1428_p2, %p1422_p13 }
  0x42   :  { %1432 = shalt.err (!%p1429_p3)
}
  0x43   :  { %60 = dma.hbm_to_vmem [thread:$0]  %s1956_s3, 1024, %s1505_s23, [#allocation8], %s1440_s28, %s1440_s28, %s1441_s29  }
  0x44   :  { %1433 = dma.done.wait [#allocation3], 2048  }
  0x45   :  { %1434 = vsyncadd [#allocation3], 4294965248 }
  0x46   :  { %1435 = dma.done.wait [#allocation5], 2048  }
  0x47   :  { %1436 = vsyncadd [#allocation5], 4294965248 }
  0x48   :  { %1437 = dma.done.wait [#allocation8], 1024  }
  0x49   :  { %1438 = vsyncadd [#allocation8], 4294966272  ;;  %v1253_v0 = vld [vmem:[#allocation4] sm:$0xff]   ;;  %v1254_v1 = vld [vmem:[#allocation4 + $0x8] sm:$0xff]  }
  0x4a   :  { %1132 = vmatprep.subr.bf16.mxu0 %v1253_v0  ;;  %v1255_v2 = vld [vmem:[#allocation4 + $0x10] sm:$0xff]   ;;  %v1256_v3 = vld [vmem:[#allocation4 + $0x18] sm:$0xff]   ;;  %v76_v4 = vld [vmem:[#allocation2] sm:$0xff] }
  0x4b   :  { %1133 = vmatpush3.bf16.msra.mxu0 %v1253_v0  ;;  %v77_v5 = vld [vmem:[#allocation2 + $0x8] sm:$0xff]  ;;  %v1257_v7 = vld [vmem:[#allocation4 + $0x20] sm:$0xff]   ;;  %v1259_v9 = vld [vmem:[#allocation4 + $0x30] sm:$0xff]  }
  0x4c   :  { %1134 = vmatprep.subr.bf16.mxu0 %v1254_v1  ;;  %v95_v6 = vpack.c.bf16 %v77_v5, %v76_v4  ;;  %v1258_v8 = vld [vmem:[#allocation4 + $0x28] sm:$0xff]   ;;  %v1260_v10 = vld [vmem:[#allocation4 + $0x38] sm:$0xff]   ;;  %v78_v11 = vld [vmem:[#allocation2 + $0x10] sm:$0xff] }
  0x4d   :  { %v79_v12 = vld [vmem:[#allocation2 + $0x18] sm:$0xff]  ;;  %v80_v13 = vld [vmem:[#allocation2 + $0x20] sm:$0xff]  ;;  %v81_v14 = vld [vmem:[#allocation2 + $0x28] sm:$0xff] }
  0x4e   :  { %1148 = vmatprep.mubr.bf16.mxu0 %v95_v6  ;;  %v96_v15 = vpack.c.bf16 %v79_v12, %v78_v11  ;;  %v97_v16 = vpack.c.bf16 %v81_v14, %v80_v13  ;;  %v82_v17 = vld [vmem:[#allocation2 + $0x30] sm:$0xff]  ;;  %v83_v18 = vld [vmem:[#allocation2 + $0x38] sm:$0xff]  ;;  %v84_v19 = vld [vmem:[#allocation2 + $0x40] sm:$0xff] }
  0x4f   :  { %1135 = vmatpush3.bf16.msra.mxu0 %v1254_v1  ;;  %v85_v20 = vld [vmem:[#allocation2 + $0x48] sm:$0xff]  ;;  %v98_v21 = vpack.c.bf16 %v83_v18, %v82_v17  ;;  %v86_v23 = vld [vmem:[#allocation2 + $0x50] sm:$0xff]  ;;  %v87_v24 = vld [vmem:[#allocation2 + $0x58] sm:$0xff] }
  0x50   :  { %1136 = vmatprep.subr.bf16.mxu0 %v1255_v2  ;;  %v99_v22 = vpack.c.bf16 %v85_v20, %v84_v19  ;;  %v88_v25 = vld [vmem:[#allocation2 + $0x60] sm:$0xff]  ;;  %v89_v26 = vld [vmem:[#allocation2 + $0x68] sm:$0xff]  ;;  %v100_v27 = vpack.c.bf16 %v87_v24, %v86_v23  ;;  %v90_v29 = vld [vmem:[#allocation2 + $0x70] sm:$0xff] }
  0x51   :  { %v101_v28 = vpack.c.bf16 %v89_v26, %v88_v25  ;;  %v91_v30 = vld [vmem:[#allocation2 + $0x78] sm:$0xff]  ;;  %v1261_v32 = vld [vmem:[#allocation6] sm:$0xff]   ;;  %v1262_v33 = vld [vmem:[#allocation6 + $0x8] sm:$0xff]  }
  0x52   :  { %v102_v31 = vpack.c.bf16 %v91_v30, %v90_v29  ;;  %1164 = vmatprep.subr.bf16.mxu1 %v1261_v32  ;;  %v1263_v34 = vld [vmem:[#allocation6 + $0x10] sm:$0xff]   ;;  %v1264_v35 = vld [vmem:[#allocation6 + $0x18] sm:$0xff]   ;;  %v1265_v36 = vld [vmem:[#allocation6 + $0x20] sm:$0xff]  }
  0x53   :  { %1137 = vmatpush3.bf16.msra.mxu0 %v1255_v2  ;;  %1165 = vmatpush3.bf16.msra.mxu1 %v1261_v32  ;;  %v1266_v37 = vld [vmem:[#allocation6 + $0x28] sm:$0xff]   ;;  %v1267_v38 = vld [vmem:[#allocation6 + $0x30] sm:$0xff]   ;;  %v1268_v39 = vld [vmem:[#allocation6 + $0x38] sm:$0xff]  }
  0x54   :  { %1138 = vmatprep.subr.bf16.mxu0 %v1256_v3  ;;  %1166 = vmatprep.subr.bf16.mxu1 %v1262_v33  ;;  %v1545_v40 = vld [vmem:[%s1957_s4] ss:$0 sm:$0xff] }
  0x57   :  { %1139 = vmatpush3.bf16.msra.mxu0 %v1256_v3  ;;  %1167 = vmatpush3.bf16.msra.mxu1 %v1262_v33 }
  0x58   :  { %1140 = vmatprep.subr.bf16.mxu0 %v1257_v7  ;;  %1168 = vmatprep.subr.bf16.mxu1 %v1263_v34 }
  0x5b   :  { %1141 = vmatpush3.bf16.msra.mxu0 %v1257_v7  ;;  %1169 = vmatpush3.bf16.msra.mxu1 %v1263_v34 }
  0x5c   :  { %1142 = vmatprep.subr.bf16.mxu0 %v1258_v8  ;;  %1170 = vmatprep.subr.bf16.mxu1 %v1264_v35 }
  0x5f   :  { %1143 = vmatpush3.bf16.msra.mxu0 %v1258_v8  ;;  %1171 = vmatpush3.bf16.msra.mxu1 %v1264_v35 }
  0x60   :  { %1144 = vmatprep.subr.bf16.mxu0 %v1259_v9  ;;  %1172 = vmatprep.subr.bf16.mxu1 %v1265_v36 }
  0x63   :  { %1145 = vmatpush3.bf16.msra.mxu0 %v1259_v9  ;;  %1173 = vmatpush3.bf16.msra.mxu1 %v1265_v36 }
  0x64   :  { %1146 = vmatprep.subr.bf16.mxu0 %v1260_v10  ;;  %1174 = vmatprep.subr.bf16.mxu1 %v1266_v37 }
  0x67   :  { %1147 = vmatpush3.bf16.msra.mxu0 %v1260_v10  ;;  %1175 = vmatpush3.bf16.msra.mxu1 %v1266_v37 }
  0x68   :  { %1176 = vmatprep.subr.bf16.mxu1 %v1267_v38 }
  0x6a   :  { %1149 = vmatmul.mubr.bf16.vlgmr.msra.gmra.mrb[0].mxu0 %v96_v15 }
  0x6b   :  { %1152 = vmatprep.mubr.bf16.mxu0 %v97_v16  ;;  %1177 = vmatpush3.bf16.msra.mxu1 %v1267_v38 }
  0x6c   :  { %1178 = vmatprep.subr.bf16.mxu1 %v1268_v39 }
  0x6f   :  { %1179 = vmatpush3.bf16.msra.mxu1 %v1268_v39 }
  0x72   :  { %1153 = vmatmul.mubr.bf16.gmra.mrb[4].mxu0 %v98_v21 }
  0x73   :  { %1156 = vmatprep.mubr.bf16.mxu0 %v99_v22 }
  0x7a   :  { %1157 = vmatmul.mubr.bf16.gmra.mrb[8].mxu0 %v100_v27 }
  0x7b   :  { %1160 = vmatprep.mubr.bf16.mxu0 %v101_v28 }
  0x82   :  { %1161 = vmatmul.mubr.bf16.gmra.mrb[12].mxu0 %v102_v31 }
 0x13d   :  { %v1150_v41 = vpop.f32.mrb[0].mxu0 }
 0x13e   :  { %v205_v42 = vpop.f32.mrb[1].mxu0  ;;  %v214_v43 = vadd.f32 %v1150_v41, %v1545_v40 }
 0x13f   :  { %v206_v44 = vadd.f32 %v1545_v40, %v205_v42  ;;  %v1151_v45 = vpop.f32.mrb[2].mxu0 }
 0x140   :  { %v217_v46 = vadd.f32 %v1151_v45, %v1545_v40  ;;  %v208_v47 = vpop.f32.mrb[3].mxu0  ;;  %v1553_v50 = vmax.f32 %v214_v43, 0.0 }
 0x141   :  { %v1550_v48 = vmax.f32 %v206_v44, 0.0  ;;  %v209_v49 = vadd.f32 %v1545_v40, %v208_v47 }
 0x142   :  { %v1557_v52 = vmax.f32 %v217_v46, 0.0  ;;  %v308_v59 = vmul.f32 %v1553_v50, %v1553_v50 }
 0x143   :  { %v1555_v51 = vmax.f32 %v209_v49, 0.0  ;;  %v306_v53 = vmul.f32 %v1550_v48, %v1550_v48 }
 0x144   :  { %v309_v0 = vmul.f32 %v1557_v52, %v1557_v52 }
 0x145   :  { %v284_v54 = vadd.f32 %v1555_v51, %v1550_v48  ;;  %v307_v55 = vmul.f32 %v1555_v51, %v1555_v51  ;;  %v1154_v56 = vpop.f32.mrb[4].mxu0 }
 0x146   :  { %v230_v57 = vadd.f32 %v1154_v56, %v1545_v40  ;;  %v221_v58 = vpop.f32.mrb[5].mxu0 }
 0x147   :  { %v285_v60 = vadd.f32 %v284_v54, %v1553_v50  ;;  %v322_v61 = vadd.f32 %v307_v55, %v306_v53  ;;  %v222_v62 = vadd.f32 %v1545_v40, %v221_v58  ;;  %v1155_v63 = vpop.f32.mrb[6].mxu0 }
 0x148   :  { %v233_v1 = vadd.f32 %v1155_v63, %v1545_v40  ;;  %v224_v2 = vpop.f32.mrb[7].mxu0  ;;  %v1577_v7 = vmax.f32 %v230_v57, 0.0 }
 0x149   :  { %v323_v3 = vadd.f32 %v322_v61, %v308_v59  ;;  %v1573_v4 = vmax.f32 %v222_v62, 0.0  ;;  %v286_v5 = vadd.f32 %v285_v60, %v1557_v52  ;;  %v225_v6 = vadd.f32 %v1545_v40, %v224_v2 }
 0x14a   :  { %v1584_v12 = vmax.f32 %v233_v1, 0.0  ;;  %v312_v19 = vmul.f32 %v1577_v7, %v1577_v7 }
 0x14b   :  { %v287_v8 = vadd.f32 %v286_v5, %v1573_v4  ;;  %v310_v9 = vmul.f32 %v1573_v4, %v1573_v4  ;;  %v324_v10 = vadd.f32 %v323_v3, %v309_v0  ;;  %v1582_v11 = vmax.f32 %v225_v6, 0.0 }
 0x14c   :  { %v313_v24 = vmul.f32 %v1584_v12, %v1584_v12 }
 0x14d   :  { %v325_v13 = vadd.f32 %v324_v10, %v310_v9  ;;  %v288_v14 = vadd.f32 %v287_v8, %v1582_v11  ;;  %v311_v15 = vmul.f32 %v1582_v11, %v1582_v11  ;;  %v1158_v16 = vpop.f32.mrb[8].mxu0 }
 0x14e   :  { %v246_v17 = vadd.f32 %v1158_v16, %v1545_v40  ;;  %v237_v18 = vpop.f32.mrb[9].mxu0 }
 0x14f   :  { %v289_v20 = vadd.f32 %v288_v14, %v1577_v7  ;;  %v326_v21 = vadd.f32 %v325_v13, %v311_v15  ;;  %v238_v22 = vadd.f32 %v1545_v40, %v237_v18  ;;  %v1159_v23 = vpop.f32.mrb[10].mxu0 }
 0x150   :  { %v249_v25 = vadd.f32 %v1159_v23, %v1545_v40  ;;  %v240_v26 = vpop.f32.mrb[11].mxu0  ;;  %v1601_v31 = vmax.f32 %v246_v17, 0.0 }
 0x151   :  { %v327_v27 = vadd.f32 %v326_v21, %v312_v19  ;;  %v1597_v28 = vmax.f32 %v238_v22, 0.0  ;;  %v290_v29 = vadd.f32 %v289_v20, %v1584_v12  ;;  %v241_v30 = vadd.f32 %v1545_v40, %v240_v26 }
 0x152   :  { %v1608_v36 = vmax.f32 %v249_v25, 0.0  ;;  %v316_v44 = vmul.f32 %v1601_v31, %v1601_v31 }
 0x153   :  { %v291_v32 = vadd.f32 %v290_v29, %v1597_v28  ;;  %v314_v33 = vmul.f32 %v1597_v28, %v1597_v28  ;;  %v328_v34 = vadd.f32 %v327_v27, %v313_v24  ;;  %v1606_v35 = vmax.f32 %v241_v30, 0.0 }
 0x154   :  { %v317_v53 = vmul.f32 %v1608_v36, %v1608_v36 }
 0x155   :  { %v329_v37 = vadd.f32 %v328_v34, %v314_v33  ;;  %v292_v38 = vadd.f32 %v291_v32, %v1606_v35  ;;  %v315_v39 = vmul.f32 %v1606_v35, %v1606_v35  ;;  %v1162_v41 = vpop.f32.mrb[12].mxu0 }
 0x156   :  { %v262_v42 = vadd.f32 %v1162_v41, %v1545_v40  ;;  %v253_v43 = vpop.f32.mrb[13].mxu0 }
 0x157   :  { %v293_v45 = vadd.f32 %v292_v38, %v1601_v31  ;;  %v330_v46 = vadd.f32 %v329_v37, %v315_v39  ;;  %v254_v47 = vadd.f32 %v1545_v40, %v253_v43  ;;  %v1163_v49 = vpop.f32.mrb[14].mxu0  ;;  %v352_v37 = vlaneseq  ;;  %v93_v39 = vld [vmem:[%s1957_s4 + $0x1] sm:$0x1] }
 0x158   :  { %v265_v54 = vadd.f32 %v1163_v49, %v1545_v40  ;;  %v256_v55 = vpop.f32.mrb[15].mxu0  ;;  %v1623_v60 = vmax.f32 %v262_v42, 0.0 }
 0x159   :  { %v331_v56 = vadd.f32 %v330_v46, %v316_v44  ;;  %v280_v57 = vmax.f32 %v254_v47, 0.0  ;;  %v294_v58 = vadd.f32 %v293_v45, %v1608_v36  ;;  %v257_v59 = vadd.f32 %v1545_v40, %v256_v55  ;;  %v94_v44 = vld [vmem:[%s1957_s4 + $0x2] sm:$0x1] }
 0x15a   :  { %v1625_v2 = vmax.f32 %v265_v54, 0.0  ;;  %v320_v6 = vmul.f32 %v1623_v60, %v1623_v60  ;;  %v353_v38 = vshrl.u32 %v352_v37, 7 }
 0x15b   :  { %v295_v61 = vadd.f32 %v294_v58, %v280_v57  ;;  %v318_v62 = vmul.f32 %v280_v57, %v280_v57  ;;  %v332_v63 = vadd.f32 %v331_v56, %v317_v53  ;;  %v281_v0 = vmax.f32 %v257_v59, 0.0 }
 0x15c   :  { %v321_v40 = vmul.f32 %v1625_v2, %v1625_v2  ;;  %v1636_v41 = vsub.s32 0, %v353_v38 }
 0x15d   :  { %v333_v1 = vadd.f32 %v332_v63, %v318_v62  ;;  %v296_v3 = vadd.f32 %v295_v61, %v281_v0  ;;  %v319_v5 = vmul.f32 %v281_v0, %v281_v0 }
 0x15f   :  { %v297_v8 = vadd.f32 %v296_v3, %v1623_v60  ;;  %v334_v9 = vadd.f32 %v333_v1, %v319_v5 }
 0x161   :  { %v298_v10 = vadd.f32 %v297_v8, %v1625_v2  ;;  %v335_v13 = vadd.f32 %v334_v9, %v320_v6 }
 0x163   :  { %v299_v14 = vrot.slane %v298_v10, 4  ;;  %v336_v15 = vadd.f32 %v335_v13, %v321_v40 }
 0x165   :  { %v300_v16 = vadd.f32 %v299_v14, %v298_v10  ;;  %v337_v17 = vrot.slane %v336_v15, 4 }
 0x167   :  { %v301_v18 = vrot.slane %v300_v16, 2  ;;  %v338_v19 = vadd.f32 %v337_v17, %v336_v15 }
 0x169   :  { %v302_v20 = vadd.f32 %v301_v18, %v300_v16  ;;  %v339_v21 = vrot.slane %v338_v19, 2 }
 0x16b   :  { %v303_v22 = vrot.slane %v302_v20, 1  ;;  %v340_v23 = vadd.f32 %v339_v21, %v338_v19 }
 0x16d   :  { %v304_v24 = vadd.f32 %v303_v22, %v302_v20  ;;  %v341_v25 = vrot.slane %v340_v23, 1  ;;  %v1269_v22 = vld [vmem:[#allocation7] sm:$0xff]  }
 0x16e   :  { %1196 = vmatprep.subr.bf16.mxu0 %v1269_v22  ;;  %1228 = vmatprep.subr.bf16.mxu1 %v1269_v22 }
 0x16f   :  { %v305_v26 = vmul.f32 0.0078125, %v304_v24  ;;  %v342_v27 = vadd.f32 %v341_v25, %v340_v23  ;;  %1197 = vmatpush3.bf16.msra.mxu0 %v1269_v22  ;;  %v1272_v23 = vld [vmem:[#allocation7 + $0x18] sm:$0xff]   ;;  %v1273_v24 = vld [vmem:[#allocation7 + $0x20] sm:$0xff]   ;;  %v1274_v25 = vld [vmem:[#allocation7 + $0x28] sm:$0xff]  }
 0x171   :  { %v343_v29 = vmul.f32 0.0078125, %v342_v27  ;;  %v344_v30 = vmul.f32 %v305_v26, %v305_v26  ;;  %v1276_v27 = vld [vmem:[#allocation7 + $0x38] sm:$0xff]  }
 0x173   :  { %v345_v32 = vsub.f32 %v343_v29, %v344_v30  ;;  %v1660_v29 = vld [vmem:[%s1957_s4 + $0x3] ss:$0 sm:$0xff] }
 0x175   :  { %v346_v33 = vmax.f32 %v345_v32, 0.0 }
 0x177   :  { %v347_v34 = vadd.f32 1e-05, %v346_v33 }
 0x179   :  { %1277 = vrsqrt.f32 %v347_v34 }
 0x183   :  { %v1278_v42 = vpop.eup %1277 }
 0x184   :  { %v349_v43 = vmul.f32 %v1278_v42, %v93_v39 }
 0x186   :  { %v350_v45 = vmul.f32 %v349_v43, %v305_v26  ;;  %v355_v46 = vrot.slane %v349_v43, %v1636_v41  ;;  %v1275_v26 = vld [vmem:[#allocation7 + $0x30] sm:$0xff]  }
 0x188   :  { %v351_v47 = vsub.f32 %v94_v44, %v350_v45  ;;  %v369_v49 = vmul.f32 %v355_v46, %v281_v0  ;;  %v356_v53 = vmul.f32 %v355_v46, %v1550_v48  ;;  %v357_v54 = vmul.f32 %v355_v46, %v1555_v51 }
 0x189   :  { %v358_v55 = vmul.f32 %v355_v46, %v1553_v50  ;;  %v359_v56 = vmul.f32 %v355_v46, %v1557_v52  ;;  %v360_v58 = vmul.f32 %v355_v46, %v1573_v4  ;;  %v361_v59 = vmul.f32 %v355_v46, %v1582_v11 }
 0x18a   :  { %v375_v61 = vrot.slane %v351_v47, %v1636_v41  ;;  %v362_v62 = vmul.f32 %v355_v46, %v1577_v7  ;;  %v363_v63 = vmul.f32 %v355_v46, %v1584_v12  ;;  %v364_v0 = vmul.f32 %v355_v46, %v1597_v28 }
 0x18b   :  { %v365_v48 = vmul.f32 %v355_v46, %v1606_v35  ;;  %v366_v51 = vmul.f32 %v355_v46, %v1601_v31  ;;  %v367_v50 = vmul.f32 %v355_v46, %v1608_v36  ;;  %v368_v1 = vmul.f32 %v355_v46, %v280_v57 }
 0x18c   :  { %v376_v52 = vadd.f32 %v375_v61, %v356_v53  ;;  %v377_v3 = vadd.f32 %v375_v61, %v357_v54  ;;  %v378_v4 = vadd.f32 %v375_v61, %v358_v55  ;;  %v379_v5 = vadd.f32 %v375_v61, %v359_v56 }
 0x18d   :  { %v380_v11 = vadd.f32 %v375_v61, %v360_v58  ;;  %v381_v6 = vadd.f32 %v375_v61, %v361_v59  ;;  %v382_v8 = vadd.f32 %v375_v61, %v362_v62  ;;  %v383_v9 = vadd.f32 %v375_v61, %v363_v63 }
 0x18e   :  { %v395_v7 = vpack.c.bf16 %v377_v3, %v376_v52  ;;  %v396_v40 = vpack.c.bf16 %v379_v5, %v378_v4  ;;  %v384_v12 = vadd.f32 %v375_v61, %v364_v0  ;;  %v385_v10 = vadd.f32 %v375_v61, %v365_v48 }
 0x18f   :  { %v397_v28 = vpack.c.bf16 %v381_v6, %v380_v11  ;;  %v398_v13 = vpack.c.bf16 %v383_v9, %v382_v8  ;;  %v386_v35 = vadd.f32 %v375_v61, %v366_v51  ;;  %v387_v14 = vadd.f32 %v375_v61, %v367_v50 }
 0x190   :  { %1180 = vmatprep.mubr.bf16.mxu1 %v395_v7  ;;  %v399_v31 = vpack.c.bf16 %v385_v10, %v384_v12  ;;  %v388_v36 = vadd.f32 %v375_v61, %v368_v1  ;;  %v389_v57 = vadd.f32 %v375_v61, %v369_v49  ;;  %v370_v15 = vmul.f32 %v355_v46, %v1623_v60  ;;  %v1270_v60 = vld [vmem:[#allocation7 + $0x8] sm:$0xff]  }
 0x191   :  { %1181 = vmatmul.mubr.bf16.vlgmr.msra.gmra.mrb[0].mxu1 %v396_v40  ;;  %v400_v16 = vpack.c.bf16 %v387_v14, %v386_v35  ;;  %v371_v17 = vmul.f32 %v355_v46, %v1625_v2  ;;  %1198 = vmatprep.subr.bf16.mxu0 %v1270_v60  ;;  %v1271_v2 = vld [vmem:[#allocation7 + $0x10] sm:$0xff]  }
 0x192   :  { %1184 = vmatprep.mubr.bf16.mxu1 %v397_v28  ;;  %v401_v18 = vpack.c.bf16 %v389_v57, %v388_v36  ;;  %v390_v19 = vadd.f32 %v375_v61, %v370_v15  ;;  %1236 = vmatpush3.bf16.msra.mxu1 %v1269_v22 }
 0x193   :  { %v391_v20 = vadd.f32 %v375_v61, %v371_v17  ;;  %1229 = vmatprep.subr.bf16.mxu1 %v1270_v60  ;;  %1199 = vmatpush3.bf16.msra.mxu0 %v1270_v60 }
 0x194   :  { %1200 = vmatprep.subr.bf16.mxu0 %v1271_v2 }
 0x195   :  { %v402_v21 = vpack.c.bf16 %v391_v20, %v390_v19 }
 0x196   :  { %1237 = vmatpush3.bf16.msra.mxu1 %v1270_v60 }
 0x197   :  { %1230 = vmatprep.subr.bf16.mxu1 %v1271_v2  ;;  %1201 = vmatpush3.bf16.msra.mxu0 %v1271_v2 }
 0x198   :  { %1202 = vmatprep.subr.bf16.mxu0 %v1272_v23 }
 0x199   :  { %1185 = vmatmul.mubr.bf16.gmra.mrb[4].mxu1 %v398_v13 }
 0x19a   :  { %1188 = vmatprep.mubr.bf16.mxu1 %v399_v31  ;;  %1238 = vmatpush3.bf16.msra.mxu1 %v1271_v2 }
 0x19b   :  { %1231 = vmatprep.subr.bf16.mxu1 %v1272_v23  ;;  %1203 = vmatpush3.bf16.msra.mxu0 %v1272_v23 }
 0x19c   :  { %1204 = vmatprep.subr.bf16.mxu0 %v1273_v24 }
 0x19e   :  { %1239 = vmatpush3.bf16.msra.mxu1 %v1272_v23 }
 0x19f   :  { %1232 = vmatprep.subr.bf16.mxu1 %v1273_v24  ;;  %1205 = vmatpush3.bf16.msra.mxu0 %v1273_v24 }
 0x1a0   :  { %1206 = vmatprep.subr.bf16.mxu0 %v1274_v25 }
 0x1a1   :  { %1189 = vmatmul.mubr.bf16.gmra.mrb[8].mxu1 %v400_v16 }
 0x1a2   :  { %1192 = vmatprep.mubr.bf16.mxu1 %v401_v18  ;;  %1240 = vmatpush3.bf16.msra.mxu1 %v1273_v24 }
 0x1a3   :  { %1233 = vmatprep.subr.bf16.mxu1 %v1274_v25  ;;  %1207 = vmatpush3.bf16.msra.mxu0 %v1274_v25 }
 0x1a4   :  { %1208 = vmatprep.subr.bf16.mxu0 %v1275_v26 }
 0x1a6   :  { %1241 = vmatpush3.bf16.msra.mxu1 %v1274_v25 }
 0x1a7   :  { %1234 = vmatprep.subr.bf16.mxu1 %v1275_v26  ;;  %1209 = vmatpush3.bf16.msra.mxu0 %v1275_v26 }
 0x1a8   :  { %1210 = vmatprep.subr.bf16.mxu0 %v1276_v27 }
 0x1a9   :  { %1193 = vmatmul.mubr.bf16.gmra.mrb[12].mxu1 %v402_v21 }
 0x1aa   :  { %1242 = vmatpush3.bf16.msra.mxu1 %v1275_v26 }
 0x1ab   :  { %1235 = vmatprep.subr.bf16.mxu1 %v1276_v27  ;;  %1211 = vmatpush3.bf16.msra.mxu0 %v1276_v27 }
 0x1ae   :  { %1243 = vmatpush3.bf16.msra.mxu1 %v1276_v27 }
 0x264   :  { %v1182_v30 = vpop.f32.mrb[0].mxu1 }
 0x265   :  { %v505_v32 = vpop.f32.mrb[1].mxu1  ;;  %v514_v33 = vadd.f32 %v1182_v30, %v1660_v29 }
 0x266   :  { %v506_v34 = vadd.f32 %v1660_v29, %v505_v32  ;;  %v1183_v37 = vpop.f32.mrb[2].mxu1 }
 0x267   :  { %v517_v38 = vadd.f32 %v1183_v37, %v1660_v29  ;;  %v508_v39 = vpop.f32.mrb[3].mxu1  ;;  %v1668_v44 = vmax.f32 %v514_v33, 0.0 }
 0x268   :  { %v1665_v42 = vmax.f32 %v506_v34, 0.0  ;;  %v509_v43 = vadd.f32 %v1660_v29, %v508_v39 }
 0x269   :  { %v1672_v46 = vmax.f32 %v517_v38, 0.0  ;;  %v608_v58 = vmul.f32 %v1668_v44, %v1668_v44 }
 0x26a   :  { %v1670_v45 = vmax.f32 %v509_v43, 0.0  ;;  %v606_v47 = vmul.f32 %v1665_v42, %v1665_v42 }
 0x26b   :  { %v609_v0 = vmul.f32 %v1672_v46, %v1672_v46 }
 0x26c   :  { %v584_v49 = vadd.f32 %v1670_v45, %v1665_v42  ;;  %v607_v53 = vmul.f32 %v1670_v45, %v1670_v45  ;;  %v1186_v54 = vpop.f32.mrb[4].mxu1 }
 0x26d   :  { %v530_v55 = vadd.f32 %v1186_v54, %v1660_v29  ;;  %v521_v56 = vpop.f32.mrb[5].mxu1 }
 0x26e   :  { %v585_v59 = vadd.f32 %v584_v49, %v1668_v44  ;;  %v622_v61 = vadd.f32 %v607_v53, %v606_v47  ;;  %v522_v62 = vadd.f32 %v1660_v29, %v521_v56  ;;  %v1187_v63 = vpop.f32.mrb[6].mxu1 }
 0x26f   :  { %v533_v48 = vadd.f32 %v1187_v63, %v1660_v29  ;;  %v524_v51 = vpop.f32.mrb[7].mxu1  ;;  %v1692_v4 = vmax.f32 %v530_v55, 0.0 }
 0x270   :  { %v623_v50 = vadd.f32 %v622_v61, %v608_v58  ;;  %v1688_v1 = vmax.f32 %v522_v62, 0.0  ;;  %v586_v52 = vadd.f32 %v585_v59, %v1672_v46  ;;  %v525_v3 = vadd.f32 %v1660_v29, %v524_v51 }
 0x271   :  { %v1699_v9 = vmax.f32 %v533_v48, 0.0  ;;  %v612_v35 = vmul.f32 %v1692_v4, %v1692_v4 }
 0x272   :  { %v587_v5 = vadd.f32 %v586_v52, %v1688_v1  ;;  %v610_v11 = vmul.f32 %v1688_v1, %v1688_v1  ;;  %v624_v6 = vadd.f32 %v623_v50, %v609_v0  ;;  %v1697_v8 = vmax.f32 %v525_v3, 0.0 }
 0x273   :  { %v613_v15 = vmul.f32 %v1699_v9, %v1699_v9 }
 0x274   :  { %v625_v7 = vadd.f32 %v624_v6, %v610_v11  ;;  %v588_v40 = vadd.f32 %v587_v5, %v1697_v8  ;;  %v611_v12 = vmul.f32 %v1697_v8, %v1697_v8  ;;  %v1190_v10 = vpop.f32.mrb[8].mxu1 }
 0x275   :  { %v546_v28 = vadd.f32 %v1190_v10, %v1660_v29  ;;  %v537_v13 = vpop.f32.mrb[9].mxu1 }
 0x276   :  { %v589_v14 = vadd.f32 %v588_v40, %v1692_v4  ;;  %v626_v31 = vadd.f32 %v625_v7, %v611_v12  ;;  %v538_v36 = vadd.f32 %v1660_v29, %v537_v13  ;;  %v1191_v57 = vpop.f32.mrb[10].mxu1 }
 0x277   :  { %v549_v16 = vadd.f32 %v1191_v57, %v1660_v29  ;;  %v540_v17 = vpop.f32.mrb[11].mxu1  ;;  %v1716_v22 = vmax.f32 %v546_v28, 0.0 }
 0x278   :  { %v627_v18 = vadd.f32 %v626_v31, %v612_v35  ;;  %v1712_v19 = vmax.f32 %v538_v36, 0.0  ;;  %v590_v20 = vadd.f32 %v589_v14, %v1699_v9  ;;  %v541_v21 = vadd.f32 %v1660_v29, %v540_v17 }
 0x279   :  { %v1723_v25 = vmax.f32 %v549_v16, 0.0  ;;  %v616_v37 = vmul.f32 %v1716_v22, %v1716_v22 }
 0x27a   :  { %v591_v60 = vadd.f32 %v590_v20, %v1712_v19  ;;  %v614_v2 = vmul.f32 %v1712_v19, %v1712_v19  ;;  %v628_v23 = vadd.f32 %v627_v18, %v613_v15  ;;  %v1721_v24 = vmax.f32 %v541_v21, 0.0 }
 0x27b   :  { %v617_v49 = vmul.f32 %v1723_v25, %v1723_v25 }
 0x27c   :  { %v629_v26 = vadd.f32 %v628_v23, %v614_v2  ;;  %v592_v27 = vadd.f32 %v591_v60, %v1721_v24  ;;  %v615_v30 = vmul.f32 %v1721_v24, %v1721_v24  ;;  %v1194_v32 = vpop.f32.mrb[12].mxu1 }
 0x27d   :  { %v562_v33 = vadd.f32 %v1194_v32, %v1660_v29  ;;  %v553_v34 = vpop.f32.mrb[13].mxu1 }
 0x27e   :  { %v593_v38 = vadd.f32 %v592_v27, %v1716_v22  ;;  %v630_v39 = vadd.f32 %v629_v26, %v615_v30  ;;  %v554_v43 = vadd.f32 %v1660_v29, %v553_v34  ;;  %v1195_v47 = vpop.f32.mrb[14].mxu1  ;;  %v393_v27 = vld [vmem:[%s1957_s4 + $0x4] sm:$0x1] }
 0x27f   :  { %v565_v53 = vadd.f32 %v1195_v47, %v1660_v29  ;;  %v556_v54 = vpop.f32.mrb[15].mxu1  ;;  %v1738_v61 = vmax.f32 %v562_v33, 0.0  ;;  %v394_v33 = vld [vmem:[%s1957_s4 + $0x5] sm:$0x1] }
 0x280   :  { %v631_v55 = vadd.f32 %v630_v39, %v616_v37  ;;  %v580_v56 = vmax.f32 %v554_v43, 0.0  ;;  %v594_v58 = vadd.f32 %v593_v38, %v1723_v25  ;;  %v557_v59 = vadd.f32 %v1660_v29, %v556_v54 }
 0x281   :  { %v1740_v50 = vmax.f32 %v565_v53, 0.0  ;;  %v620_v5 = vmul.f32 %v1738_v61, %v1738_v61 }
 0x282   :  { %v595_v62 = vadd.f32 %v594_v58, %v580_v56  ;;  %v618_v63 = vmul.f32 %v580_v56, %v580_v56  ;;  %v632_v0 = vadd.f32 %v631_v55, %v617_v49  ;;  %v581_v48 = vmax.f32 %v557_v59, 0.0 }
 0x283   :  { %v621_v29 = vmul.f32 %v1740_v50, %v1740_v50 }
 0x284   :  { %v633_v51 = vadd.f32 %v632_v0, %v618_v63  ;;  %v596_v52 = vadd.f32 %v595_v62, %v581_v48  ;;  %v619_v3 = vmul.f32 %v581_v48, %v581_v48 }
 0x286   :  { %v597_v11 = vadd.f32 %v596_v52, %v1738_v61  ;;  %v634_v6 = vadd.f32 %v633_v51, %v619_v3 }
 0x288   :  { %v598_v7 = vadd.f32 %v597_v11, %v1740_v50  ;;  %v635_v40 = vadd.f32 %v634_v6, %v620_v5 }
 0x28a   :  { %v599_v12 = vrot.slane %v598_v7, 4  ;;  %v636_v10 = vadd.f32 %v635_v40, %v621_v29 }
 0x28c   :  { %v600_v28 = vadd.f32 %v599_v12, %v598_v7  ;;  %v637_v13 = vrot.slane %v636_v10, 4 }
 0x28e   :  { %v601_v35 = vrot.slane %v600_v28, 2  ;;  %v638_v14 = vadd.f32 %v637_v13, %v636_v10 }
 0x290   :  { %v602_v31 = vadd.f32 %v601_v35, %v600_v28  ;;  %v639_v36 = vrot.slane %v638_v14, 2 }
 0x292   :  { %v603_v57 = vrot.slane %v602_v31, 1  ;;  %v640_v15 = vadd.f32 %v639_v36, %v638_v14 }
 0x294   :  { %v604_v16 = vadd.f32 %v603_v57, %v602_v31  ;;  %v641_v17 = vrot.slane %v640_v15, 1  ;;  %v1075_v31 = vld [vmem:[%s1957_s4 + $0x6] ss:$0 sm:$0xff] }
 0x296   :  { %v605_v18 = vmul.f32 0.0078125, %v604_v16  ;;  %v642_v20 = vadd.f32 %v641_v17, %v640_v15 }
 0x298   :  { %v643_v21 = vmul.f32 0.0078125, %v642_v20  ;;  %v644_v60 = vmul.f32 %v605_v18, %v605_v18 }
 0x29a   :  { %v645_v2 = vsub.f32 %v643_v21, %v644_v60 }
 0x29c   :  { %v646_v23 = vmax.f32 %v645_v2, 0.0 }
 0x29e   :  { %v647_v26 = vadd.f32 1e-05, %v646_v23 }
 0x2a0   :  { %1279 = vrsqrt.f32 %v647_v26 }
 0x2aa   :  { %v1280_v30 = vpop.eup %1279 }
 0x2ab   :  { %v649_v32 = vmul.f32 %v1280_v30, %v393_v27 }
 0x2ad   :  { %v650_v34 = vmul.f32 %v649_v32, %v605_v18  ;;  %v655_v37 = vrot.slane %v649_v32, %v1636_v41 }
 0x2af   :  { %v651_v38 = vsub.f32 %v394_v33, %v650_v34  ;;  %v669_v39 = vmul.f32 %v655_v37, %v581_v48  ;;  %v656_v43 = vmul.f32 %v655_v37, %v1665_v42  ;;  %v657_v47 = vmul.f32 %v655_v37, %v1670_v45 }
 0x2b0   :  { %v664_v49 = vmul.f32 %v655_v37, %v1712_v19  ;;  %v665_v53 = vmul.f32 %v655_v37, %v1721_v24  ;;  %v658_v54 = vmul.f32 %v655_v37, %v1668_v44  ;;  %v659_v55 = vmul.f32 %v655_v37, %v1672_v46 }
 0x2b1   :  { %v675_v58 = vrot.slane %v651_v38, %v1636_v41  ;;  %v666_v59 = vmul.f32 %v655_v37, %v1716_v22  ;;  %v667_v62 = vmul.f32 %v655_v37, %v1723_v25  ;;  %v660_v63 = vmul.f32 %v655_v37, %v1688_v1 }
 0x2b2   :  { %v661_v42 = vmul.f32 %v655_v37, %v1697_v8  ;;  %v668_v0 = vmul.f32 %v655_v37, %v580_v56  ;;  %v662_v45 = vmul.f32 %v655_v37, %v1692_v4  ;;  %v663_v19 = vmul.f32 %v655_v37, %v1699_v9 }
 0x2b3   :  { %v676_v24 = vadd.f32 %v675_v58, %v656_v43  ;;  %v677_v48 = vadd.f32 %v675_v58, %v657_v47  ;;  %v684_v44 = vadd.f32 %v675_v58, %v664_v49  ;;  %v685_v51 = vadd.f32 %v675_v58, %v665_v53 }
 0x2b4   :  { %v678_v46 = vadd.f32 %v675_v58, %v658_v54  ;;  %v679_v52 = vadd.f32 %v675_v58, %v659_v55  ;;  %v686_v3 = vadd.f32 %v675_v58, %v666_v59  ;;  %v687_v5 = vadd.f32 %v675_v58, %v667_v62 }
 0x2b5   :  { %v694_v22 = vpack.c.bf16 %v677_v48, %v676_v24  ;;  %v698_v11 = vpack.c.bf16 %v685_v51, %v684_v44  ;;  %v680_v25 = vadd.f32 %v675_v58, %v660_v63  ;;  %v681_v6 = vadd.f32 %v675_v58, %v661_v42 }
 0x2b6   :  { %v695_v1 = vpack.c.bf16 %v679_v52, %v678_v46  ;;  %v699_v29 = vpack.c.bf16 %v687_v5, %v686_v3  ;;  %v688_v8 = vadd.f32 %v675_v58, %v668_v0  ;;  %v689_v56 = vadd.f32 %v675_v58, %v669_v39 }
 0x2b7   :  { %1212 = vmatprep.mubr.bf16.mxu0 %v694_v22  ;;  %1220 = vmatprep.mubr.bf16.mxu1 %v698_v11  ;;  %v696_v4 = vpack.c.bf16 %v681_v6, %v680_v25  ;;  %v682_v9 = vadd.f32 %v675_v58, %v662_v45  ;;  %v683_v7 = vadd.f32 %v675_v58, %v663_v19  ;;  %v693_v45 = vld [vmem:[%s1957_s4 + $0x7] sm:$0x1]  ;;  %v1447_v5 = vmov 0  }
 0x2b8   :  { %1213 = vmatmul.mubr.bf16.vlgmr.msra.gmra.mrb[16].mxu0 %v695_v1  ;;  %1221 = vmatmul.mubr.bf16.vlgmr.msra.gmra.mrb[16].mxu1 %v699_v29  ;;  %v700_v40 = vpack.c.bf16 %v689_v56, %v688_v8  ;;  %v670_v12 = vmul.f32 %v655_v37, %v1738_v61  ;;  %v671_v10 = vmul.f32 %v655_v37, %v1740_v50  ;;  %vm899_vm0 = vcmp.gt.f32.partialorder %v693_v45, 0.5 }
 0x2b9   :  { %1216 = vmatprep.mubr.bf16.mxu0 %v696_v4  ;;  %v697_v28 = vpack.c.bf16 %v683_v7, %v682_v9  ;;  %v948_v22 = vsel %vm899_vm0, 1, %v1447_v5 }
 0x2ba   :  { %1224 = vmatprep.mubr.bf16.mxu1 %v700_v40  ;;  %v690_v13 = vadd.f32 %v675_v58, %v670_v12  ;;  %v691_v35 = vadd.f32 %v675_v58, %v671_v10  ;;  %v952_v56 = vrot.slane %v948_v22, %v1636_v41 }
 0x2bc   :  { %v701_v14 = vpack.c.bf16 %v691_v35, %v690_v13  ;;  %vm1798_vm1 = vcmp.eq.s32.totalorder %v952_v56, 1 }
 0x2c0   :  { %1217 = vmatmul.mubr.bf16.gmra.mrb[20].mxu0 %v697_v28  ;;  %1225 = vmatmul.mubr.bf16.gmra.mrb[20].mxu1 %v701_v14 }
 0x38b   :  { %v1214_v36 = vpop.f32.mrb[16].mxu0  ;;  %v1222_v57 = vpop.f32.mrb[16].mxu1 }
 0x38c   :  { %v813_v15 = vadd.f32 %v1214_v36, %v1075_v31  ;;  %v845_v16 = vadd.f32 %v1222_v57, %v1075_v31  ;;  %v804_v17 = vpop.f32.mrb[17].mxu0  ;;  %v836_v61 = vpop.f32.mrb[17].mxu1 }
 0x38d   :  { %v1215_v18 = vpop.f32.mrb[18].mxu0  ;;  %v1223_v50 = vpop.f32.mrb[18].mxu1  ;;  %v805_v60 = vadd.f32 %v1075_v31, %v804_v17  ;;  %v837_v27 = vadd.f32 %v1075_v31, %v836_v61 }
 0x38e   :  { %887 = vmax.xlane.f32.xlu0 %v845_v16  ;;  %v839_v20 = vpop.f32.mrb[19].mxu1  ;;  %871 = vmax.xlane.f32.xlu1 %v813_v15  ;;  %v807_v21 = vpop.f32.mrb[19].mxu0  ;;  %v816_v2 = vadd.f32 %v1215_v18, %v1075_v31  ;;  %v848_v30 = vadd.f32 %v1223_v50, %v1075_v31 }
 0x38f   :  { %v840_v43 = vadd.f32 %v1075_v31, %v839_v20  ;;  %v808_v47 = vadd.f32 %v1075_v31, %v807_v21 }
 0x392   :  { %873 = vmax.xlane.f32.xlu1 %v816_v2  ;;  %867 = vmax.xlane.f32.xlu0 %v805_v60 }
 0x393   :  { %v1218_v23 = vpop.f32.mrb[20].mxu0  ;;  %v1226_v26 = vpop.f32.mrb[20].mxu1 }
 0x394   :  { %v820_v32 = vpop.f32.mrb[21].mxu0  ;;  %v852_v33 = vpop.f32.mrb[21].mxu1  ;;  %v829_v49 = vadd.f32 %v1218_v23, %v1075_v31  ;;  %v1788_v62 = vadd.f32 %v1226_v26, %v1075_v31 }
 0x395   :  { %v1219_v34 = vpop.f32.mrb[22].mxu0  ;;  %v1227_v37 = vpop.f32.mrb[22].mxu1  ;;  %v1776_v54 = vadd.f32 %v1075_v31, %v820_v32  ;;  %v1782_v58 = vadd.f32 %v1075_v31, %v852_v33 }
 0x396   :  { %v855_v38 = vpop.f32.mrb[23].mxu1  ;;  %889 = vmax.xlane.f32.xlu1 %v848_v30  ;;  %v823_v39 = vpop.f32.mrb[23].mxu0  ;;  %883 = vmax.xlane.f32.xlu0 %v837_v27  ;;  %v1773_v53 = vadd.f32 %v1219_v34, %v1075_v31  ;;  %v1790_v63 = vadd.f32 %v1227_v37, %v1075_v31 }
 0x397   :  { %v1778_v55 = vadd.f32 %v1075_v31, %v823_v39  ;;  %v1784_v59 = vadd.f32 %v1075_v31, %v855_v38 }
 0x39a   :  { %885 = vmax.xlane.f32.xlu1 %v840_v43  ;;  %869 = vmax.xlane.f32.xlu0 %v808_v47 }
 0x39e   :  { %881 = vmax.xlane.f32.xlu1 %v1773_v53  ;;  %879 = vmax.xlane.f32.xlu0 %v829_v49 }
 0x3a2   :  { %877 = vmax.xlane.f32.xlu1 %v1778_v55  ;;  %875 = vmax.xlane.f32.xlu0 %v1776_v54 }
 0x3a6   :  { %893 = vmax.xlane.f32.xlu1 %v1784_v59  ;;  %891 = vmax.xlane.f32.xlu0 %v1782_v58 }
 0x3aa   :  { %897 = vmax.xlane.f32.xlu1 %v1790_v63  ;;  %895 = vmax.xlane.f32.xlu0 %v1788_v62 }
 0x41b   :  { %v888_v42 = vpop.xlane.xlu0 %887  ;;  %v872_v0 = vpop.xlane.xlu1 %871 }
 0x41c   :  { %v910_v19 = vsub.f32 %v845_v16, %v888_v42  ;;  %v902_v24 = vsub.f32 %v813_v15, %v872_v0 }
 0x41e   :  { %v920_v48 = vmul.f32 1.442695, %v902_v24  ;;  %v936_v44 = vmul.f32 1.442695, %v910_v19 }
 0x41f   :  { %v874_v51 = vpop.xlane.xlu1 %873  ;;  %v868_v46 = vpop.xlane.xlu0 %867 }
 0x420   :  { %v903_v52 = vsub.f32 %v816_v2, %v874_v51  ;;  %v900_v3 = vsub.f32 %v805_v60, %v868_v46  ;;  %1281 = vpow2.f32 %v920_v48 }
 0x421   :  { %1283 = vpow2.f32 %v936_v44 }
 0x422   :  { %v922_v11 = vmul.f32 1.442695, %v903_v52  ;;  %v916_v25 = vmul.f32 1.442695, %v900_v3 }
 0x423   :  { %v890_v6 = vpop.xlane.xlu1 %889  ;;  %v884_v1 = vpop.xlane.xlu0 %883 }
 0x424   :  { %1285 = vpow2.f32 %v922_v11  ;;  %v911_v29 = vsub.f32 %v848_v30, %v890_v6  ;;  %v908_v8 = vsub.f32 %v837_v27, %v884_v1 }
 0x425   :  { %1287 = vpow2.f32 %v916_v25 }
 0x426   :  { %v938_v4 = vmul.f32 1.442695, %v911_v29  ;;  %v932_v9 = vmul.f32 1.442695, %v908_v8 }
 0x427   :  { %v886_v7 = vpop.xlane.xlu1 %885  ;;  %v870_v40 = vpop.xlane.xlu0 %869 }
 0x428   :  { %1289 = vpow2.f32 %v938_v4  ;;  %v909_v12 = vsub.f32 %v840_v43, %v886_v7  ;;  %v901_v10 = vsub.f32 %v808_v47, %v870_v40 }
 0x429   :  { %1291 = vpow2.f32 %v932_v9 }
 0x42a   :  { %v918_v13 = vmul.f32 1.442695, %v901_v10  ;;  %v1282_v35 = vpop.eup %1281  ;;  %v934_v14 = vmul.f32 1.442695, %v909_v12 }
 0x42b   :  { %v882_v31 = vpop.xlane.xlu1 %881  ;;  %v880_v36 = vpop.xlane.xlu0 %879  ;;  %v1805_v15 = vsel %vm1798_vm1, %v1282_v35, 0.0 }
 0x42c   :  { %v907_v41 = vsub.f32 %v1773_v53, %v882_v31  ;;  %v906_v57 = vsub.f32 %v829_v49, %v880_v36  ;;  %v1284_v16 = vpop.eup %1283  ;;  %1293 = vpow2.f32 %v918_v13  ;;  %974 = vadd.xlane.f32.xlu0 %v1805_v15 }
 0x42d   :  { %1295 = vpow2.f32 %v934_v14  ;;  %v1817_v23 = vsel %vm1798_vm1, %v1284_v16, 0.0 }
 0x42e   :  { %v1286_v17 = vpop.eup %1285  ;;  %v928_v61 = vmul.f32 1.442695, %v906_v57  ;;  %v930_v18 = vmul.f32 1.442695, %v907_v41 }
 0x42f   :  { %v878_v50 = vpop.xlane.xlu1 %877  ;;  %v876_v20 = vpop.xlane.xlu0 %875  ;;  %v1810_v21 = vsel %vm1798_vm1, %v1286_v17, 0.0 }
 0x430   :  { %v905_v60 = vsub.f32 %v1778_v55, %v878_v50  ;;  %v904_v2 = vsub.f32 %v1776_v54, %v876_v20  ;;  %976 = vadd.xlane.f32.xlu1 %v1810_v21  ;;  %v1288_v26 = vpop.eup %1287  ;;  %1297 = vpow2.f32 %v928_v61  ;;  %990 = vadd.xlane.f32.xlu0 %v1817_v23 }
 0x431   :  { %1299 = vpow2.f32 %v930_v18  ;;  %v1829_v43 = vsel %vm1798_vm1, %v1288_v26, 0.0 }
 0x432   :  { %v1290_v27 = vpop.eup %1289  ;;  %v924_v30 = vmul.f32 1.442695, %v904_v2  ;;  %v926_v32 = vmul.f32 1.442695, %v905_v60 }
 0x433   :  { %v894_v33 = vpop.xlane.xlu1 %893  ;;  %v892_v34 = vpop.xlane.xlu0 %891  ;;  %v1822_v37 = vsel %vm1798_vm1, %v1290_v27, 0.0 }
 0x434   :  { %v913_v38 = vsub.f32 %v1784_v59, %v894_v33  ;;  %v912_v39 = vsub.f32 %v1782_v58, %v892_v34  ;;  %992 = vadd.xlane.f32.xlu1 %v1822_v37  ;;  %v1292_v47 = vpop.eup %1291  ;;  %1301 = vpow2.f32 %v924_v30  ;;  %970 = vadd.xlane.f32.xlu0 %v1829_v43 }
 0x435   :  { %1303 = vpow2.f32 %v926_v32  ;;  %v1836_v0 = vsel %vm1798_vm1, %v1292_v47, 0.0 }
 0x436   :  { %v940_v49 = vmul.f32 1.442695, %v912_v39  ;;  %v1294_v53 = vpop.eup %1293  ;;  %v942_v54 = vmul.f32 1.442695, %v913_v38 }
 0x437   :  { %v898_v55 = vpop.xlane.xlu1 %897  ;;  %v896_v42 = vpop.xlane.xlu0 %895  ;;  %v1840_v45 = vsel %vm1798_vm1, %v1294_v53, 0.0 }
 0x438   :  { %v915_v59 = vsub.f32 %v1790_v63, %v898_v55  ;;  %v914_v58 = vsub.f32 %v1788_v62, %v896_v42  ;;  %v1296_v19 = vpop.eup %1295  ;;  %1305 = vpow2.f32 %v940_v49  ;;  %986 = vadd.xlane.f32.xlu0 %v1836_v0  ;;  %972 = vadd.xlane.f32.xlu1 %v1840_v45 }
 0x439   :  { %1307 = vpow2.f32 %v942_v54  ;;  %v1846_v62 = vsel %vm1798_vm1, %v1296_v19, 0.0 }
 0x43a   :  { %v944_v24 = vmul.f32 1.442695, %v914_v58  ;;  %v1298_v48 = vpop.eup %1297  ;;  %v946_v63 = vmul.f32 1.442695, %v915_v59 }
 0x43b   :  { %v1850_v44 = vsel %vm1798_vm1, %v1298_v48, 0.0  ;;  %v1300_v51 = vpop.eup %1299 }
 0x43c   :  { %1309 = vpow2.f32 %v944_v24  ;;  %988 = vadd.xlane.f32.xlu1 %v1846_v62  ;;  %982 = vadd.xlane.f32.xlu0 %v1850_v44  ;;  %v1856_v52 = vsel %vm1798_vm1, %v1300_v51, 0.0 }
 0x43d   :  { %1311 = vpow2.f32 %v946_v63 }
 0x43e   :  { %v1302_v46 = vpop.eup %1301 }
 0x43f   :  { %v1860_v3 = vsel %vm1798_vm1, %v1302_v46, 0.0  ;;  %v1304_v5 = vpop.eup %1303 }
 0x440   :  { %984 = vadd.xlane.f32.xlu1 %v1856_v52  ;;  %978 = vadd.xlane.f32.xlu0 %v1860_v3  ;;  %v1866_v11 = vsel %vm1798_vm1, %v1304_v5, 0.0 }
 0x442   :  { %v1306_v22 = vpop.eup %1305 }
 0x443   :  { %v1870_v25 = vsel %vm1798_vm1, %v1306_v22, 0.0  ;;  %v1308_v6 = vpop.eup %1307 }
 0x444   :  { %980 = vadd.xlane.f32.xlu1 %v1866_v11  ;;  %994 = vadd.xlane.f32.xlu0 %v1870_v25  ;;  %v1876_v29 = vsel %vm1798_vm1, %v1308_v6, 0.0 }
 0x446   :  { %v1310_v1 = vpop.eup %1309 }
 0x447   :  { %v1880_v8 = vsel %vm1798_vm1, %v1310_v1, 0.0  ;;  %v1312_v56 = vpop.eup %1311 }
 0x448   :  { %996 = vadd.xlane.f32.xlu1 %v1876_v29  ;;  %998 = vadd.xlane.f32.xlu0 %v1880_v8  ;;  %v1886_v4 = vsel %vm1798_vm1, %v1312_v56, 0.0 }
 0x44c   :  { %1000 = vadd.xlane.f32.xlu1 %v1886_v4 }
 0x4b9   :  { %v975_v9 = vpop.xlane.xlu0 %974 }
 0x4ba   :  { %1313 = vrcp.f32 %v975_v9 }
 0x4bd   :  { %v977_v7 = vpop.xlane.xlu1 %976  ;;  %v991_v40 = vpop.xlane.xlu0 %990 }
 0x4be   :  { %1315 = vrcp.f32 %v977_v7 }
 0x4bf   :  { %1317 = vrcp.f32 %v991_v40 }
 0x4c1   :  { %v993_v12 = vpop.xlane.xlu1 %992  ;;  %v971_v10 = vpop.xlane.xlu0 %970 }
 0x4c2   :  { %1319 = vrcp.f32 %v993_v12 }
 0x4c3   :  { %1321 = vrcp.f32 %v971_v10 }
 0x4c4   :  { %v1314_v13 = vpop.eup %1313 }
 0x4c5   :  { %v1007_v35 = vmul.f32 %v1314_v13, %v1805_v15  ;;  %v973_v14 = vpop.xlane.xlu1 %972  ;;  %v987_v31 = vpop.xlane.xlu0 %986 }
 0x4c6   :  { %1323 = vrcp.f32 %v973_v14 }
 0x4c7   :  { %1036 = vst [vmem:[%s1958_s5 + $0x10] sm:$0xff] %v1007_v35  ;;  %1325 = vrcp.f32 %v987_v31 }
 0x4c8   :  { %v1316_v28 = vpop.eup %1315 }
 0x4c9   :  { %v1318_v36 = vpop.eup %1317  ;;  %v1009_v41 = vmul.f32 %v1316_v28, %v1810_v21  ;;  %v989_v16 = vpop.xlane.xlu1 %988 }
 0x4ca   :  { %v1023_v57 = vmul.f32 %v1318_v36, %v1817_v23  ;;  %v983_v17 = vpop.xlane.xlu0 %982  ;;  %1327 = vrcp.f32 %v989_v16 }
 0x4cb   :  { %1037 = vst [vmem:[%s1958_s5 + $0x18] sm:$0xff] %v1009_v41  ;;  %1329 = vrcp.f32 %v983_v17 }
 0x4cc   :  { %v1320_v15 = vpop.eup %1319  ;;  %1044 = vst [vmem:[%s1958_s5 + $0x50] sm:$0xff] %v1023_v57 }
 0x4cd   :  { %v1322_v61 = vpop.eup %1321  ;;  %v1025_v18 = vmul.f32 %v1320_v15, %v1822_v37  ;;  %v985_v20 = vpop.xlane.xlu1 %984 }
 0x4ce   :  { %v1003_v50 = vmul.f32 %v1322_v61, %v1829_v43  ;;  %v979_v21 = vpop.xlane.xlu0 %978  ;;  %1331 = vrcp.f32 %v985_v20 }
 0x4cf   :  { %1045 = vst [vmem:[%s1958_s5 + $0x58] sm:$0xff] %v1025_v18  ;;  %1333 = vrcp.f32 %v979_v21 }
 0x4d0   :  { %1034 = vst [vmem:[%s1958_s5] sm:$0xff] %v1003_v50  ;;  %v1324_v60 = vpop.eup %1323 }
 0x4d1   :  { %v1326_v2 = vpop.eup %1325  ;;  %v1005_v23 = vmul.f32 %v1324_v60, %v1840_v45  ;;  %v981_v26 = vpop.xlane.xlu1 %980 }
 0x4d2   :  { %v995_v27 = vpop.xlane.xlu0 %994  ;;  %v1019_v30 = vmul.f32 %v1326_v2, %v1836_v0  ;;  %1335 = vrcp.f32 %v981_v26 }
 0x4d3   :  { %1035 = vst [vmem:[%s1958_s5 + $0x8] sm:$0xff] %v1005_v23  ;;  %1337 = vrcp.f32 %v995_v27 }
 0x4d4   :  { %v1328_v32 = vpop.eup %1327  ;;  %1042 = vst [vmem:[%s1958_s5 + $0x40] sm:$0xff] %v1019_v30 }
 0x4d5   :  { %v1330_v33 = vpop.eup %1329  ;;  %v1021_v34 = vmul.f32 %v1328_v32, %v1846_v62  ;;  %v997_v37 = vpop.xlane.xlu1 %996 }
 0x4d6   :  { %v999_v38 = vpop.xlane.xlu0 %998  ;;  %v1015_v39 = vmul.f32 %v1330_v33, %v1850_v44  ;;  %1339 = vrcp.f32 %v997_v37 }
 0x4d7   :  { %1043 = vst [vmem:[%s1958_s5 + $0x48] sm:$0xff] %v1021_v34  ;;  %1341 = vrcp.f32 %v999_v38 }
 0x4d8   :  { %v1332_v43 = vpop.eup %1331  ;;  %1040 = vst [vmem:[%s1958_s5 + $0x30] sm:$0xff] %v1015_v39 }
 0x4d9   :  { %v1334_v47 = vpop.eup %1333  ;;  %v1017_v49 = vmul.f32 %v1332_v43, %v1856_v52  ;;  %v1001_v53 = vpop.xlane.xlu1 %1000 }
 0x4da   :  { %v1011_v54 = vmul.f32 %v1334_v47, %v1860_v3  ;;  %1343 = vrcp.f32 %v1001_v53 }
 0x4db   :  { %1041 = vst [vmem:[%s1958_s5 + $0x38] sm:$0xff] %v1017_v49 }
 0x4dc   :  { %v1336_v55 = vpop.eup %1335  ;;  %1038 = vst [vmem:[%s1958_s5 + $0x20] sm:$0xff] %v1011_v54 }
 0x4dd   :  { %v1338_v42 = vpop.eup %1337  ;;  %v1013_v59 = vmul.f32 %v1336_v55, %v1866_v11 }
 0x4de   :  { %v1027_v58 = vmul.f32 %v1338_v42, %v1870_v25 }
 0x4df   :  { %1039 = vst [vmem:[%s1958_s5 + $0x28] sm:$0xff] %v1013_v59 }
 0x4e0   :  { %v1340_v0 = vpop.eup %1339  ;;  %1046 = vst [vmem:[%s1958_s5 + $0x60] sm:$0xff] %v1027_v58 }
 0x4e1   :  { %v1342_v45 = vpop.eup %1341  ;;  %v1029_v19 = vmul.f32 %v1340_v0, %v1876_v29 }
 0x4e2   :  { %v1031_v24 = vmul.f32 %v1342_v45, %v1880_v8 }
 0x4e3   :  { %1047 = vst [vmem:[%s1958_s5 + $0x68] sm:$0xff] %v1029_v19 }
 0x4e4   :  { %v1344_v48 = vpop.eup %1343  ;;  %1048 = vst [vmem:[%s1958_s5 + $0x70] sm:$0xff] %v1031_v24 }
 0x4e5   :  { %v1033_v63 = vmul.f32 %v1344_v48, %v1886_v4 }
 0x4e7   :  { %1049 = vst [vmem:[%s1958_s5 + $0x78] sm:$0xff] %v1033_v63 }
 0x4e8   :  { %1054 = vsyncpa [#allocation3], 1 }
 0x4e9   :  { %1055 = vsyncpa [#allocation5], 1 }
 0x4ea   :  { %1056 = vsyncpa [#allocation8], 1 }

</bundles_post_ra>
